<compile_context>
chip_gen: v5e
topology: v5e:2x2
jax: 0.10.0
libtpu: 0.0.40
codegen_flags: <defaults>
</compile_context>

<pallas_src>
import functools

import jax
import jax.numpy as jnp
from jax.experimental import pallas as pl
from jax.experimental.pallas import tpu as pltpu


def _label_smoothing_kernel(x_ref, t_ref, o_ref, acc_ref, *,
                            smoothing, confidence, bs, tile):
    i = pl.program_id(0)

    @pl.when(i == 0)
    def _init():
        acc_ref[...] = jnp.zeros_like(acc_ref)

    x = x_ref[...].astype(jnp.float32)          # (2, TILE), lane-dense, in-kernel cast
    x0 = x[0:1, :]                              # class-0 logits  (1, TILE)
    x1 = x[1:2, :]                              # class-1 logits  (1, TILE)
    tf = t_ref[...].astype(jnp.float32)         # (1, TILE) target in {0, 1}

    # log_softmax over the two classes, per lane (numerically stable):
    #   lse = max(x0, x1) + log1p(exp(-|x0 - x1|))   -> one EUP exp + one log1p
    m = jnp.maximum(x0, x1)
    lse = m + jnp.log1p(jnp.exp(-jnp.abs(x0 - x1)))
    lp0 = x0 - lse
    lp1 = x1 - lse

    # clamp(one_hot(target, 2), smoothing, confidence) without materializing
    # the one-hot: column 0 of one_hot == 1 - target, column 1 == target.
    # (For smoothing > 0.5 both jnp.clip and torch.clamp collapse to `confidence`.)
    t0 = jnp.clip(1.0 - tf, smoothing, confidence)
    t1 = jnp.clip(tf, smoothing, confidence)

    # weight = [[1, 3]];  per-sample loss = -sum(weight * t * logprobs, axis=1)
    loss = -(t0 * lp0 + 3.0 * t1 * lp1)         # (1, TILE)

    # Mask out batch padding (only the last tile can contain padded lanes).
    col = jax.lax.broadcasted_iota(jnp.int32, loss.shape, 1) + i * tile
    loss = jnp.where(col < bs, loss, 0.0)

    acc_ref[...] = acc_ref[...] + jnp.sum(loss)

    @pl.when(i == pl.num_programs(0) - 1)
    def _finalize():
        o_ref[...] = acc_ref[...] * (1.0 / bs)  # single mean-scale at the end


def label_smoothing_loss(x, target, smoothing=0.0, *, tile=256 * 1024):
    """JAX/Pallas equivalent of LabelSmoothing(smoothing)(x, target)."""
    bs, class_num = x.shape
    assert class_num == 2, "module hard-codes one_hot(target, 2) and weight [1,3]"
    confidence = 1.0 - smoothing

    # --- lane-dense relayout (layout plumbing only, no compute hoisted) ------
    bs_128 = 128 * pl.cdiv(bs, 128)             # pad batch to lane multiple
    tile = min(tile, bs_128)                    # lane-dense tile (multiple of 128)
    num_tiles = pl.cdiv(bs_128, tile)
    bs_pad = num_tiles * tile

    x_t = jnp.transpose(x, (1, 0))              # (2, bs), keep native dtype
    x_t = jnp.pad(x_t, ((0, 0), (0, bs_pad - bs)))
    t_row = jnp.pad(target.astype(jnp.int32).reshape(1, bs),
                    ((0, 0), (0, bs_pad - bs)))

    kernel = functools.partial(
        _label_smoothing_kernel,
        smoothing=float(smoothing), confidence=float(confidence),
        bs=bs, tile=tile)

    out = pl.pallas_call(
        kernel,
        out_shape=jax.ShapeDtypeStruct((1, 1), jnp.float32),
        grid=(num_tiles,),
        in_specs=[
            pl.BlockSpec((2, tile), lambda i: (0, i)),   # logits, batch on lanes
            pl.BlockSpec((1, tile), lambda i: (0, i)),   # targets, batch on lanes
        ],
        out_specs=pl.BlockSpec((1, 1), lambda i: (0, 0)),
        scratch_shapes=[pltpu.VMEM((1, 1), jnp.float32)],
        compiler_params=pltpu.CompilerParams(
            # batch axis is a reduction into a single output block
            dimension_semantics=("arbitrary",),
        ),
    )(x_t, t_row)
    return out[0, 0]


def _reference(x, target, smoothing):
    """Pure-JAX reference mirroring the PyTorch forward."""
    confidence = 1.0 - smoothing
    bs = x.shape[0]
    weight = jnp.tile(jnp.array([[1.0, 3.0]], jnp.float32), (bs, 1))
    logprobs = jax.nn.log_softmax(x.astype(jnp.float32), axis=-1)
    t = jax.nn.one_hot(target, 2, dtype=jnp.float32)
    t = jnp.clip(t, smoothing, confidence) * weight
    loss = -jnp.sum(t * logprobs, axis=1)
    return jnp.mean(loss)


if __name__ == "__main__":
    key = jax.random.PRNGKey(0)
    kx, kt = jax.random.split(key)

    bs, class_num = 8, 2
    smoothing = 0.1

    x = jax.random.normal(kx, (bs, class_num), dtype=jnp.float32)
    target = jax.random.randint(kt, (bs,), 0, class_num, dtype=jnp.int32)

    loss = label_smoothing_loss(x, target, smoothing=smoothing)
    loss = jax.block_until_ready(loss)

    ref = _reference(x, target, smoothing)
    assert jnp.allclose(loss, ref, atol=1e-5, rtol=1e-5), (loss, ref)

    print("KERNEL_OK")
</pallas_src>

<mosaic_0001>
module attributes {stable_mosaic.version = 11 : i64} {
  func.func @_label_smoothing_kernel(%arg0: i32, %arg1: memref<2x128xf32, #tpu.memory_space<vmem>>, %arg2: memref<1x128xi32, #tpu.memory_space<vmem>>, %arg3: memref<1x1xf32, #tpu.memory_space<vmem>>, %arg4: memref<1x1xf32, #tpu.memory_space<vmem>>) attributes {dimension_semantics = [#tpu.dimension_semantics<arbitrary>], iteration_bounds = array<i64: 1>, scalar_prefetch = 0 : i64, scratch_operands = 1 : i64, tpu.core_type = #tpu.core_type<tc>, window_params = [{transform_indices = @transform_0, window_bounds = array<i64: 2, 128>}, {transform_indices = @transform_1, window_bounds = array<i64: 1, 128>}, {pipeline_mode = #tpu.pipeline_mode<synchronous>, transform_indices = @transform_2, window_bounds = array<i64: 1, 1>}]} {
    %c0_i32 = arith.constant 0 : i32
    %0 = arith.cmpi eq, %arg0, %c0_i32 : i32
    %1 = arith.extui %0 : i1 to i32
    %c0_i32_0 = arith.constant 0 : i32
    %2 = arith.cmpi ne, %1, %c0_i32_0 : i32
    scf.if %2 {
      %cst_19 = arith.constant 0.000000e+00 : f32
      %54 = vector.broadcast %cst_19 : f32 to vector<1x1xf32>
      %c0_20 = arith.constant 0 : index
      %c0_21 = arith.constant 0 : index
      %55 = vector.load %arg4[%c0_20, %c0_21] : memref<1x1xf32, #tpu.memory_space<vmem>>, vector<1x1xf32>
      tpu.vector_store %arg4[%c0_20, %c0_21], %54 {strides = array<i32>} : memref<1x1xf32, #tpu.memory_space<vmem>>, vector<1x1xf32>,
    } else {
    }
    %c0 = arith.constant 0 : index
    %c0_1 = arith.constant 0 : index
    %3 = vector.load %arg1[%c0, %c0_1] : memref<2x128xf32, #tpu.memory_space<vmem>>, vector<2x128xf32>
    %4 = vector.extract_strided_slice %3 {offsets = [0, 0], sizes = [1, 128], strides = [1, 1]} : vector<2x128xf32> to vector<1x128xf32>
    %5 = vector.extract_strided_slice %3 {offsets = [1, 0], sizes = [1, 128], strides = [1, 1]} : vector<2x128xf32> to vector<1x128xf32>
    %c0_2 = arith.constant 0 : index
    %c0_3 = arith.constant 0 : index
    %6 = vector.load %arg2[%c0_2, %c0_3] : memref<1x128xi32, #tpu.memory_space<vmem>>, vector<1x128xi32>
    %7 = arith.sitofp %6 : vector<1x128xi32> to vector<1x128xf32>
    %8 = arith.maximumf %4, %5 : vector<1x128xf32>
    %9 = arith.subf %4, %5 : vector<1x128xf32>
    %10 = math.absf %9 : vector<1x128xf32>
    %cst = arith.constant 0.000000e+00 : f32
    %11 = vector.broadcast %cst : f32 to vector<1x128xf32>
    %12 = arith.subf %11, %10 : vector<1x128xf32>
    %13 = math.exp %12 : vector<1x128xf32>
    %14 = math.log1p %13 : vector<1x128xf32>
    %15 = arith.addf %8, %14 : vector<1x128xf32>
    %16 = arith.subf %4, %15 : vector<1x128xf32>
    %17 = arith.subf %5, %15 : vector<1x128xf32>
    %cst_4 = arith.constant 1.000000e+00 : f32
    %18 = vector.broadcast %cst_4 : f32 to vector<1x128xf32>
    %19 = arith.subf %18, %7 : vector<1x128xf32>
    %cst_5 = arith.constant 1.000000e-01 : f32
    %cst_6 = arith.constant 0.899999976 : f32
    %20 = vector.broadcast %cst_5 : f32 to vector<1x128xf32>
    %21 = arith.maximumf %20, %19 : vector<1x128xf32>
    %22 = vector.broadcast %cst_6 : f32 to vector<1x128xf32>
    %23 = arith.minimumf %22, %21 : vector<1x128xf32>
    %cst_7 = arith.constant 1.000000e-01 : f32
    %cst_8 = arith.constant 0.899999976 : f32
    %24 = vector.broadcast %cst_7 : f32 to vector<1x128xf32>
    %25 = arith.maximumf %24, %7 : vector<1x128xf32>
    %26 = vector.broadcast %cst_8 : f32 to vector<1x128xf32>
    %27 = arith.minimumf %26, %25 : vector<1x128xf32>
    %28 = arith.mulf %23, %16 : vector<1x128xf32>
    %cst_9 = arith.constant 3.000000e+00 : f32
    %29 = vector.broadcast %cst_9 : f32 to vector<1x128xf32>
    %30 = arith.mulf %29, %27 : vector<1x128xf32>
    %31 = arith.mulf %30, %17 : vector<1x128xf32>
    %32 = arith.addf %28, %31 : vector<1x128xf32>
    %cst_10 = arith.constant 0.000000e+00 : f32
    %33 = vector.broadcast %cst_10 : f32 to vector<1x128xf32>
    %34 = arith.subf %33, %32 : vector<1x128xf32>
    %35 = tpu.iota {dimensions = array<i32: 1>} : vector<1x128xi32>
    %c128_i32 = arith.constant 128 : i32
    %36 = arith.muli %arg0, %c128_i32 : i32
    %37 = vector.broadcast %36 : i32 to vector<1x128xi32>
    %38 = arith.addi %35, %37 : vector<1x128xi32>
    %c8_i32 = arith.constant 8 : i32
    %39 = vector.broadcast %c8_i32 : i32 to vector<1x128xi32>
    %40 = arith.cmpi slt, %38, %39 : vector<1x128xi32>
    %cst_11 = arith.constant 0.000000e+00 : f32
    %41 = vector.broadcast %cst_11 : f32 to vector<1x128xf32>
    %42 = arith.select %40, %34, %41 : vector<1x128xi1>, vector<1x128xf32>
    %c0_12 = arith.constant 0 : index
    %c0_13 = arith.constant 0 : index
    %43 = vector.load %arg4[%c0_12, %c0_13] : memref<1x1xf32, #tpu.memory_space<vmem>>, vector<1x1xf32>
    %44 = vector.shape_cast %42 : vector<1x128xf32> to vector<1x1x128xf32>
    %cst_14 = arith.constant dense<0.000000e+00> : vector<1xf32>
    %45 = vector.multi_reduction <add>, %44, %cst_14 [1, 2] : vector<1x1x128xf32> to vector<1xf32>
    %46 = vector.shape_cast %45 : vector<1xf32> to vector<1x1x1xf32>
    %47 = vector.extract %46[0, 0, 0] : f32 from vector<1x1x1xf32>
    %48 = vector.broadcast %47 : f32 to vector<1x1xf32>
    %49 = arith.addf %43, %48 : vector<1x1xf32>
    %c0_15 = arith.constant 0 : index
    %c0_16 = arith.constant 0 : index
    %50 = vector.load %arg4[%c0_15, %c0_16] : memref<1x1xf32, #tpu.memory_space<vmem>>, vector<1x1xf32>
    tpu.vector_store %arg4[%c0_15, %c0_16], %49 {strides = array<i32>} : memref<1x1xf32, #tpu.memory_space<vmem>>, vector<1x1xf32>,
    %c0_i32_17 = arith.constant 0 : i32
    %51 = arith.cmpi eq, %arg0, %c0_i32_17 : i32
    %52 = arith.extui %51 : i1 to i32
    %c0_i32_18 = arith.constant 0 : i32
    %53 = arith.cmpi ne, %52, %c0_i32_18 : i32
    scf.if %53 {
      %c0_19 = arith.constant 0 : index
      %c0_20 = arith.constant 0 : index
      %54 = vector.load %arg4[%c0_19, %c0_20] : memref<1x1xf32, #tpu.memory_space<vmem>>, vector<1x1xf32>
      %cst_21 = arith.constant 1.250000e-01 : f32
      %55 = vector.broadcast %cst_21 : f32 to vector<1x1xf32>
      %56 = arith.mulf %54, %55 : vector<1x1xf32>
      %c0_22 = arith.constant 0 : index
      %c0_23 = arith.constant 0 : index
      %57 = vector.load %arg3[%c0_22, %c0_23] : memref<1x1xf32, #tpu.memory_space<vmem>>, vector<1x1xf32>
      tpu.vector_store %arg3[%c0_22, %c0_23], %56 {strides = array<i32>} : memref<1x1xf32, #tpu.memory_space<vmem>>, vector<1x1xf32>,
    } else {
    }
    return
  }
  func.func @transform_0(%arg0: i32) -> (i32, i32) {
    %c0_i32 = arith.constant 0 : i32
    %c0_i32_0 = arith.constant 0 : i32
    return %c0_i32, %arg0 : i32, i32
  }
  func.func @transform_1(%arg0: i32) -> (i32, i32) {
    %c0_i32 = arith.constant 0 : i32
    %c0_i32_0 = arith.constant 0 : i32
    return %c0_i32, %arg0 : i32, i32
  }
  func.func @transform_2(%arg0: i32) -> (i32, i32) {
    %c0_i32 = arith.constant 0 : i32
    %c0_i32_0 = arith.constant 0 : i32
    %c0_i32_1 = arith.constant 0 : i32
    return %c0_i32, %c0_i32_0 : i32, i32
  }
}

</mosaic_0001>

<bundles_post_ra>
// kernel: tpu_custom_call.1
= control target key start
LH: loop header
LB: loop body
LE: loop exit
PB: predicated region body
PF: predicated region fallthrough
CT: control target
= control target key end

     0   :  { %7 = vsyncpa [#allocation4], 0  ;;  %s254_s0 = inlined_call_operand.hbm [shape: f32[2,128], index: 0, kind: input, shape index: {}]   ;;  %s255_s1 = inlined_call_operand.hbm [shape: s32[1,128], index: 1, kind: input, shape index: {}]   ;;  %s256_s2 = inlined_call_operand.hbm [shape: f32[1,1], index: 2, kind: output, shape index: {}]  }
   0x1   :  { %8 = vsyncpa [#allocation7], 0 }
   0x2   :  { %9 = vsyncpa [#allocation5], 0  ;;  %s15_s11 = sshll.u32 %s254_s0, 4  ;;  %s223_s12 = smov [#allocation3]   ;;  %s16_s11 = int_to_ptr.hbm [resolvable:$true] %s15_s11 }
   0x3   :  { %s17_s13 = sshll.u32 %s223_s12, 4  ;;  %s26_s16 = sshll.u32 %s255_s1, 4  ;;  %s18_s13 = int_to_ptr.vmem [resolvable:$true] %s17_s13  ;;  %s27_s16 = int_to_ptr.hbm [resolvable:$true] %s26_s16 }
   0x4   :  { %20 = dma.hbm_to_vmem [thread:$0]  %s16_s11, 32, %s18_s13, [#allocation4]  }
   0x5   :  { %s224_s17 = smov [#allocation6]  }
   0x6   :  { %s28_s18 = sshll.u32 %s224_s17, 4  ;;  %s29_s18 = int_to_ptr.vmem [resolvable:$true] %s28_s18 }
   0x7   :  { %31 = dma.hbm_to_vmem [thread:$0]  %s27_s16, 16, %s29_s18, [#allocation7]  }
   0x8   :  { %217 = dma.done.wait [#allocation4], 32  }
   0x9   :  { %218 = vsyncadd [#allocation4], 4294967264 }
   0xa   :  { %219 = dma.done.wait [#allocation7], 16  }
   0xb   :  { %220 = vsyncadd [#allocation7], 4294967280  ;;  %v46_v0 = vld [vmem:[#allocation3] sm:$0x3]  ;;  %v47_v11 = vld [vmem:[#allocation6] sm:$0x1]  ;;  %v88_v27 = vlaneseq }
   0xc   :  { %v50_v1 = vrot.slane %v46_v0, 1  ;;  %v48_v14 = vcvt.s32.f32 %v47_v11  ;;  %vm96_vm2 = vcmask 1040384   ;;  %vm44_vm3 = vcmask 0   ;;  %s226_s1 = smov [#allocation8]   ;;  %s124_s22 = sshll.u32 %s256_s2, 4  ;;  %s125_s22 = int_to_ptr.hbm [resolvable:$true] %s124_s22 }
   0xd   :  { %v89_v31 = vand.u32 127, %v88_v27  ;;  %v225_v37 = vmov 0.0   ;;  %s122_s19 = sshll.u32 %s226_s1, 4  ;;  %s123_s19 = int_to_ptr.vmem [resolvable:$true] %s122_s19 }
   0xe   :  { %v53_v2 = vsub.f32 %v46_v0, %v50_v1  ;;  %v52_v15 = vmax.f32 %v46_v0, %v50_v1  ;;  %v73_v19 = vsub.f32 1.0, %v48_v14  ;;  %v76_v21 = vmax.f32 %v48_v14, 0.1  ;;  %45 = vst.msk [vmem:[#allocation2] sm:$0x1] %vm44_vm3, %v225_v37 }
   0xf   :  { %vm93_vm1 = vcmp.lt.s32.totalorder %v89_v31, 8 }
  0x10   :  { %v54_v3 = vand.u32 2147483647, %v53_v2  ;;  %v74_v23 = vmax.f32 %v73_v19, 0.1  ;;  %v77_v24 = vmin.f32 %v76_v21, 0.9 }
  0x12   :  { %v55_v4 = vsub.f32 0.0, %v54_v3  ;;  %v75_v26 = vmin.f32 %v74_v23, 0.9  ;;  %v79_v28 = vmul.f32 3.0, %v77_v24 }
  0x14   :  { %v56_v5 = vmul.f32 1.442695, %v55_v4 }
  0x15   :  { %v95_v45 = vld [vmem:[#allocation2] sm:$0x1] }
  0x16   :  { %141 = vpow2.f32 %v56_v5 }
  0x1c   :  { %v142_v6 = vpop.eup %141 }
  0x1d   :  { %v58_v7 = vadd.f32 1.0, %v142_v6  ;;  %v61_v8 = vmul.f32 -0.5, %v142_v6  ;;  %v64_v10 = vand.u32 2147483647, %v142_v6 }
  0x1f   :  { %143 = vlog2.f32 %v58_v7  ;;  %v62_v9 = vadd.f32 1.0, %v61_v8  ;;  %vm65_vm0 = vcmp.lt.f32.partialorder %v64_v10, 0.0004427343 }
  0x21   :  { %v63_v12 = vmul.f32 %v142_v6, %v62_v9 }
  0x25   :  { %v144_v13 = vpop.eup %143 }
  0x26   :  { %v60_v16 = vmul.f32 0.6931472, %v144_v13 }
  0x28   :  { %v66_v17 = vsel %vm65_vm0, %v63_v12, %v60_v16 }
  0x29   :  { %v67_v18 = vadd.f32 %v66_v17, %v52_v15 }
  0x2b   :  { %v70_v20 = vrot.slane %v67_v18, 7  ;;  %v68_v25 = vsub.f32 %v46_v0, %v67_v18 }
  0x2d   :  { %v72_v22 = vsub.f32 %v46_v0, %v70_v20  ;;  %v78_v29 = vmul.f32 %v75_v26, %v68_v25 }
  0x2f   :  { %81 = vst [vmem:[#allocation1] sm:$0xff] %v72_v22 }
  0x36   :  { %v83_v30 = vld [vmem:[#allocation1 + $0x1] ss:$9 sm:$0xff] }
  0x37   :  { %v85_v32 = vmul.f32 %v83_v30, %v79_v28 }
  0x39   :  { %v86_v33 = vadd.f32 %v85_v32, %v78_v29 }
  0x3b   :  { %v87_v34 = vsub.f32 0.0, %v86_v33 }
  0x3d   :  { %v94_v35 = vsel %vm93_vm1, %v87_v34, 0.0 }
  0x3e   :  { %v97_v36 = vsel %vm96_vm2, %v94_v35, 0.0 }
  0x3f   :  { %98 = vadd.xlane.f32.xlu0 %v97_v36 }
  0xb2   :  { %v99_v38 = vpop.xlane.xlu0 %98 }
  0xb3   :  { %v100_v39 = vrot.slane %v99_v38, 4 }
  0xb5   :  { %v101_v40 = vadd.f32 %v100_v39, %v99_v38 }
  0xb7   :  { %v102_v41 = vrot.slane %v101_v40, 2 }
  0xb9   :  { %v103_v42 = vadd.f32 %v102_v41, %v101_v40 }
  0xbb   :  { %v104_v43 = vrot.slane %v103_v42, 1 }
  0xbd   :  { %v105_v44 = vadd.f32 %v104_v43, %v103_v42 }
  0xbf   :  { %135 = vpush %v105_v44 }
  0xf0   :  { %s136_s0 = spop %135 }
  0xf1   :  { %v107_v46 = vstv %s136_s0 }
  0xf2   :  { %v108_v47 = vadd.f32 %v107_v46, %v95_v45 }
  0xf4   :  { %110 = vst.msk [vmem:[#allocation2] sm:$0x1] %vm44_vm3, %v108_v47 }
  0xfb   :  { %v114_v48 = vld [vmem:[#allocation2] sm:$0x1] }
  0xfc   :  { %v115_v49 = vmul.f32 0.125, %v114_v48 }
  0xfe   :  { %116 = vst.msk [vmem:[#allocation8] sm:$0x1] %vm44_vm3, %v115_v49 }
  0xff   :  { %127 = dma.vmem_to_hbm [thread:$0]  %s123_s19, 16, %s125_s22, [#allocation5]  }
 0x100   :  { %221 = dma.done.wait [#allocation5], 16  }
 0x101   :  { %222 = vsyncadd [#allocation5], 4294967280 }
 0x102   :  { %132 = vsyncpa [#allocation4], 1 }
 0x103   :  { %133 = vsyncpa [#allocation7], 1 }
 0x104   :  { %134 = vsyncpa [#allocation5], 1 }

</bundles_post_ra>
